<compile_context>
chip_gen: v7x
topology: tpu7x:2x2x1
jax: 0.10.0
libtpu: 0.0.40
codegen_flags: <defaults>
</compile_context>

<pallas_src>
import functools

import jax
import jax.numpy as jnp
from jax.experimental import pallas as pl
from jax.experimental.pallas import tpu as pltpu


DEFAULT_IGNORE_INDEX = 255


def _round_up(x: int, m: int) -> int:
    return (x + m - 1) // m * m


def _ce_kernel(logits_ref, gt_ref, sum_ref, cnt_ref, loss_acc, cnt_acc, *,
               ignore_index: int):
    # logits_ref: (C, T) logits, pixels on the lane axis
    # gt_ref:     (1, T) int32 labels (lane-dense row)
    # sum_ref/cnt_ref: (1, 128) per-batch partial outputs, resident across the
    #                  pixel-tile axis and written once at the last tile
    # loss_acc/cnt_acc: (1, T) f32 VMEM vector accumulators
    p = pl.program_id(1)

    @pl.when(p == 0)
    def _():
        loss_acc[...] = jnp.zeros_like(loss_acc)
        cnt_acc[...] = jnp.zeros_like(cnt_acc)

    logits = logits_ref[...].astype(jnp.float32)            # (C, T)
    gt = gt_ref[...]                                         # (1, T) int32

    # Numerically-stable log-sum-exp over the class (sublane) axis.
    m = jnp.max(logits, axis=0, keepdims=True)               # (1, T)
    lse = jnp.log(jnp.sum(jnp.exp(logits - m), axis=0, keepdims=True)) + m

    # Gather logits[gt[pixel], pixel] via iota/compare (no dynamic gather on TPU).
    class_iota = jax.lax.broadcasted_iota(jnp.int32, logits.shape, 0)
    picked = jnp.sum(jnp.where(class_iota == gt, logits, 0.0),
                     axis=0, keepdims=True)                  # (1, T)

    loss = lse - picked                                       # (1, T)
    valid = gt != ignore_index                                # (1, T) bool

    # Vector accumulation only (VPU); cross-lane reduce deferred to final step.
    loss_acc[...] += jnp.where(valid, loss, 0.0)
    cnt_acc[...] += valid.astype(jnp.float32)

    @pl.when(p == pl.num_programs(1) - 1)
    def _():
        sum_ref[...] = jnp.full(sum_ref.shape, jnp.sum(loss_acc[...]),
                                dtype=sum_ref.dtype)
        cnt_ref[...] = jnp.full(cnt_ref.shape, jnp.sum(cnt_acc[...]),
                                dtype=cnt_ref.dtype)


def _pick_tile(hw: int, c: int, itemsize: int) -> int:
    # Keep the double-buffered logits tiles within ~8 MiB so the kernel fits
    # v5e's 16 MiB scoped-VMEM default (v6e/v7x defaults are >= 32 MiB).
    budget_bytes = 8 * 1024 * 1024
    per_pixel = 2 * c * itemsize                 # 2 pipeline buffers
    max_tile = max(128, (budget_bytes // per_pixel) // 128 * 128)
    max_tile = min(max_tile, 8192)               # plenty to amortize step overhead
    return min(max_tile, _round_up(hw, 128))


def cross_entropy_loss(output: jax.Array, gt: jax.Array,
                       ignore_index: int = DEFAULT_IGNORE_INDEX) -> jax.Array:
    """output: [N, C, H, W] float logits; gt: [N, 1, H, W] (or [N, H, W]) labels."""
    N, C, H, W = output.shape
    if gt.ndim == 4:
        gt = gt[:, 0]                                        # squeeze(1)
    gt = gt.astype(jnp.int32)                                # .long()

    HW = H * W
    tile = _pick_tile(HW, C, jnp.dtype(output.dtype).itemsize)
    hw_pad = _round_up(HW, tile)

    # Free reshapes (no transpose, no extra HBM traffic). bf16 logits are fed
    # through as-is; the kernel upcasts in VMEM.
    logits = output.reshape(N, C, HW)
    labels = gt.reshape(N, 1, HW)
    if hw_pad != HW:
        logits = jnp.pad(logits, ((0, 0), (0, 0), (0, hw_pad - HW)))
        labels = jnp.pad(labels, ((0, 0), (0, 0), (0, hw_pad - HW)),
                         constant_values=ignore_index)       # padded pixels ignored

    grid = (N, hw_pad // tile)
    kernel = functools.partial(_ce_kernel, ignore_index=ignore_index)

    sum_out, cnt_out = pl.pallas_call(
        kernel,
        out_shape=(jax.ShapeDtypeStruct((N, 1, 128), jnp.float32),
                   jax.ShapeDtypeStruct((N, 1, 128), jnp.float32)),
        grid_spec=pltpu.PrefetchScalarGridSpec(
            num_scalar_prefetch=0,
            grid=grid,
            in_specs=[
                pl.BlockSpec((None, C, tile), lambda n, p: (n, 0, p)),
                pl.BlockSpec((None, 1, tile), lambda n, p: (n, 0, p)),
            ],
            out_specs=[
                pl.BlockSpec((None, 1, 128), lambda n, p: (n, 0, 0)),
                pl.BlockSpec((None, 1, 128), lambda n, p: (n, 0, 0)),
            ],
            scratch_shapes=[
                pltpu.VMEM((1, tile), jnp.float32),
                pltpu.VMEM((1, tile), jnp.float32),
            ],
        ),
        compiler_params=pltpu.CompilerParams(
            dimension_semantics=("parallel", "arbitrary")),
    )(logits, labels)

    # loss[gt != ignore_index].mean(): combine per-batch partials on the host graph.
    loss_sum = jnp.sum(sum_out[:, 0, 0])
    valid_cnt = jnp.sum(cnt_out[:, 0, 0])
    return (loss_sum / valid_cnt).astype(jnp.float32)


def _reference(output, gt, ignore_index=DEFAULT_IGNORE_INDEX):
    # Pure-JAX reference for sanity checking.
    if gt.ndim == 4:
        gt = gt[:, 0]
    gt = gt.astype(jnp.int32)
    logits = jnp.transpose(output, (0, 2, 3, 1)).astype(jnp.float32)  # NHWC
    lse = jax.nn.logsumexp(logits, axis=-1)
    safe_gt = jnp.where(gt == ignore_index, 0, gt)
    picked = jnp.take_along_axis(logits, safe_gt[..., None], axis=-1)[..., 0]
    loss = lse - picked
    valid = (gt != ignore_index)
    return jnp.sum(jnp.where(valid, loss, 0.0)) / jnp.sum(valid.astype(jnp.float32))


if __name__ == "__main__":
    key = jax.random.PRNGKey(0)
    k1, k2, k3 = jax.random.split(key, 3)

    N, C, H, W = 2, 4, 16, 16
    output = jax.random.normal(k1, (N, C, H, W), dtype=jnp.float32)
    # Labels in [0, C) with some pixels set to the ignore_index.
    labels = jax.random.randint(k2, (N, 1, H, W), 0, C, dtype=jnp.int32)
    ignore_mask = jax.random.bernoulli(k3, 0.2, (N, 1, H, W))
    gt = jnp.where(ignore_mask, DEFAULT_IGNORE_INDEX, labels).astype(jnp.int32)

    loss = jax.block_until_ready(cross_entropy_loss(output, gt))
    ref = jax.block_until_ready(_reference(output, gt))
    assert jnp.isfinite(loss), "loss is not finite"
    assert jnp.allclose(loss, ref, atol=1e-5, rtol=1e-5), (loss, ref)
    print("KERNEL_OK")
</pallas_src>

<mosaic_0001>
module attributes {stable_mosaic.version = 11 : i64} {
  func.func @_ce_kernel(%arg0: i32, %arg1: i32, %arg2: memref<1x4x256xf32, #tpu.memory_space<vmem>>, %arg3: memref<1x1x256xi32, #tpu.memory_space<vmem>>, %arg4: memref<1x1x128xf32, #tpu.memory_space<vmem>>, %arg5: memref<1x1x128xf32, #tpu.memory_space<vmem>>, %arg6: memref<1x256xf32, #tpu.memory_space<vmem>>, %arg7: memref<1x256xf32, #tpu.memory_space<vmem>>) attributes {dimension_semantics = [#tpu.dimension_semantics<parallel>, #tpu.dimension_semantics<arbitrary>], iteration_bounds = array<i64: 2, 1>, scalar_prefetch = 0 : i64, scratch_operands = 2 : i64, tpu.core_type = #tpu.core_type<tc>, window_params = [{transform_indices = @transform_0, window_bounds = array<i64: 1, 4, 256>}, {transform_indices = @transform_1, window_bounds = array<i64: 1, 1, 256>}, {transform_indices = @transform_2, window_bounds = array<i64: 1, 1, 128>}, {transform_indices = @transform_3, window_bounds = array<i64: 1, 1, 128>}]} {
    %c0_i32 = arith.constant 0 : i32
    %0 = arith.cmpi eq, %arg1, %c0_i32 : i32
    %1 = arith.extui %0 : i1 to i32
    %c0_i32_0 = arith.constant 0 : i32
    %2 = arith.cmpi ne, %1, %c0_i32_0 : i32
    scf.if %2 {
      %cst_20 = arith.constant 0.000000e+00 : f32
      %39 = vector.broadcast %cst_20 : f32 to vector<1x256xf32>
      %c0_21 = arith.constant 0 : index
      %c0_22 = arith.constant 0 : index
      %40 = vector.load %arg6[%c0_21, %c0_22] : memref<1x256xf32, #tpu.memory_space<vmem>>, vector<1x256xf32>
      tpu.vector_store %arg6[%c0_21, %c0_22], %39 {strides = array<i32>} : memref<1x256xf32, #tpu.memory_space<vmem>>, vector<1x256xf32>,
      %cst_23 = arith.constant 0.000000e+00 : f32
      %41 = vector.broadcast %cst_23 : f32 to vector<1x256xf32>
      %c0_24 = arith.constant 0 : index
      %c0_25 = arith.constant 0 : index
      %42 = vector.load %arg7[%c0_24, %c0_25] : memref<1x256xf32, #tpu.memory_space<vmem>>, vector<1x256xf32>
      tpu.vector_store %arg7[%c0_24, %c0_25], %41 {strides = array<i32>} : memref<1x256xf32, #tpu.memory_space<vmem>>, vector<1x256xf32>,
    } else {
    }
    %c0 = arith.constant 0 : index
    %c0_1 = arith.constant 0 : index
    %c0_2 = arith.constant 0 : index
    %3 = vector.load %arg2[%c0, %c0_1, %c0_2] : memref<1x4x256xf32, #tpu.memory_space<vmem>>, vector<1x4x256xf32>
    %4 = vector.shape_cast %3 : vector<1x4x256xf32> to vector<4x256xf32>
    %c0_3 = arith.constant 0 : index
    %c0_4 = arith.constant 0 : index
    %c0_5 = arith.constant 0 : index
    %5 = vector.load %arg3[%c0_3, %c0_4, %c0_5] : memref<1x1x256xi32, #tpu.memory_space<vmem>>, vector<1x1x256xi32>
    %6 = vector.shape_cast %5 : vector<1x1x256xi32> to vector<1x256xi32>
    %cst = arith.constant dense<0xFF800000> : vector<256xf32>
    %7 = vector.multi_reduction <maximumf>, %4, %cst [0] : vector<4x256xf32> to vector<256xf32>
    %8 = vector.shape_cast %7 : vector<256xf32> to vector<1x256xf32>
    %9 = vector.broadcast %8 : vector<1x256xf32> to vector<4x256xf32>
    %10 = arith.subf %4, %9 : vector<4x256xf32>
    %11 = math.exp %10 : vector<4x256xf32>
    %cst_6 = arith.constant dense<0.000000e+00> : vector<256xf32>
    %12 = vector.multi_reduction <add>, %11, %cst_6 [0] : vector<4x256xf32> to vector<256xf32>
    %13 = vector.shape_cast %12 : vector<256xf32> to vector<1x256xf32>
    %14 = math.log %13 : vector<1x256xf32>
    %15 = arith.addf %14, %8 : vector<1x256xf32>
    %16 = tpu.iota {dimensions = array<i32: 0>} : vector<4x256xi32>
    %17 = vector.broadcast %6 : vector<1x256xi32> to vector<4x256xi32>
    %18 = arith.cmpi eq, %16, %17 : vector<4x256xi32>
    %cst_7 = arith.constant 0.000000e+00 : f32
    %19 = vector.broadcast %cst_7 : f32 to vector<4x256xf32>
    %20 = arith.select %18, %4, %19 : vector<4x256xi1>, vector<4x256xf32>
    %cst_8 = arith.constant dense<0.000000e+00> : vector<256xf32>
    %21 = vector.multi_reduction <add>, %20, %cst_8 [0] : vector<4x256xf32> to vector<256xf32>
    %22 = vector.shape_cast %21 : vector<256xf32> to vector<1x256xf32>
    %23 = arith.subf %15, %22 : vector<1x256xf32>
    %c255_i32 = arith.constant 255 : i32
    %24 = vector.broadcast %c255_i32 : i32 to vector<1x256xi32>
    %25 = arith.cmpi ne, %6, %24 : vector<1x256xi32>
    %c0_9 = arith.constant 0 : index
    %c0_10 = arith.constant 0 : index
    %26 = vector.load %arg6[%c0_9, %c0_10] : memref<1x256xf32, #tpu.memory_space<vmem>>, vector<1x256xf32>
    %cst_11 = arith.constant 0.000000e+00 : f32
    %27 = vector.broadcast %cst_11 : f32 to vector<1x256xf32>
    %28 = arith.select %25, %23, %27 : vector<1x256xi1>, vector<1x256xf32>
    %29 = arith.addf %26, %28 : vector<1x256xf32>
    %c0_12 = arith.constant 0 : index
    %c0_13 = arith.constant 0 : index
    %30 = vector.load %arg6[%c0_12, %c0_13] : memref<1x256xf32, #tpu.memory_space<vmem>>, vector<1x256xf32>
    tpu.vector_store %arg6[%c0_12, %c0_13], %29 {strides = array<i32>} : memref<1x256xf32, #tpu.memory_space<vmem>>, vector<1x256xf32>,
    %c0_14 = arith.constant 0 : index
    %c0_15 = arith.constant 0 : index
    %31 = vector.load %arg7[%c0_14, %c0_15] : memref<1x256xf32, #tpu.memory_space<vmem>>, vector<1x256xf32>
    %32 = arith.extui %25 : vector<1x256xi1> to vector<1x256xi32>
    %33 = arith.sitofp %32 : vector<1x256xi32> to vector<1x256xf32>
    %34 = arith.addf %31, %33 : vector<1x256xf32>
    %c0_16 = arith.constant 0 : index
    %c0_17 = arith.constant 0 : index
    %35 = vector.load %arg7[%c0_16, %c0_17] : memref<1x256xf32, #tpu.memory_space<vmem>>, vector<1x256xf32>
    tpu.vector_store %arg7[%c0_16, %c0_17], %34 {strides = array<i32>} : memref<1x256xf32, #tpu.memory_space<vmem>>, vector<1x256xf32>,
    %c0_i32_18 = arith.constant 0 : i32
    %36 = arith.cmpi eq, %arg1, %c0_i32_18 : i32
    %37 = arith.extui %36 : i1 to i32
    %c0_i32_19 = arith.constant 0 : i32
    %38 = arith.cmpi ne, %37, %c0_i32_19 : i32
    scf.if %38 {
      %c0_20 = arith.constant 0 : index
      %c0_21 = arith.constant 0 : index
      %39 = vector.load %arg6[%c0_20, %c0_21] : memref<1x256xf32, #tpu.memory_space<vmem>>, vector<1x256xf32>
      %40 = vector.shape_cast %39 : vector<1x256xf32> to vector<1x1x256xf32>
      %cst_22 = arith.constant dense<0.000000e+00> : vector<1xf32>
      %41 = vector.multi_reduction <add>, %40, %cst_22 [1, 2] : vector<1x1x256xf32> to vector<1xf32>
      %42 = vector.shape_cast %41 : vector<1xf32> to vector<1x1x1xf32>
      %43 = vector.extract %42[0, 0, 0] : f32 from vector<1x1x1xf32>
      %44 = vector.broadcast %43 : f32 to vector<1x128xf32>
      %c0_23 = arith.constant 0 : index
      %c0_24 = arith.constant 0 : index
      %c0_25 = arith.constant 0 : index
      %45 = vector.load %arg4[%c0_23, %c0_24, %c0_25] : memref<1x1x128xf32, #tpu.memory_space<vmem>>, vector<1x1x128xf32>
      %46 = vector.shape_cast %45 : vector<1x1x128xf32> to vector<1x128xf32>
      %47 = vector.shape_cast %44 : vector<1x128xf32> to vector<1x1x128xf32>
      tpu.vector_store %arg4[%c0_23, %c0_24, %c0_25], %47 {strides = array<i32>} : memref<1x1x128xf32, #tpu.memory_space<vmem>>, vector<1x1x128xf32>,
      %c0_26 = arith.constant 0 : index
      %c0_27 = arith.constant 0 : index
      %48 = vector.load %arg7[%c0_26, %c0_27] : memref<1x256xf32, #tpu.memory_space<vmem>>, vector<1x256xf32>
      %49 = vector.shape_cast %48 : vector<1x256xf32> to vector<1x1x256xf32>
      %cst_28 = arith.constant dense<0.000000e+00> : vector<1xf32>
      %50 = vector.multi_reduction <add>, %49, %cst_28 [1, 2] : vector<1x1x256xf32> to vector<1xf32>
      %51 = vector.shape_cast %50 : vector<1xf32> to vector<1x1x1xf32>
      %52 = vector.extract %51[0, 0, 0] : f32 from vector<1x1x1xf32>
      %53 = vector.broadcast %52 : f32 to vector<1x128xf32>
      %c0_29 = arith.constant 0 : index
      %c0_30 = arith.constant 0 : index
      %c0_31 = arith.constant 0 : index
      %54 = vector.load %arg5[%c0_29, %c0_30, %c0_31] : memref<1x1x128xf32, #tpu.memory_space<vmem>>, vector<1x1x128xf32>
      %55 = vector.shape_cast %54 : vector<1x1x128xf32> to vector<1x128xf32>
      %56 = vector.shape_cast %53 : vector<1x128xf32> to vector<1x1x128xf32>
      tpu.vector_store %arg5[%c0_29, %c0_30, %c0_31], %56 {strides = array<i32>} : memref<1x1x128xf32, #tpu.memory_space<vmem>>, vector<1x1x128xf32>,
    } else {
    }
    return
  }
  func.func @transform_0(%arg0: i32, %arg1: i32) -> (i32, i32, i32) {
    %c0_i32 = arith.constant 0 : i32
    %c0_i32_0 = arith.constant 0 : i32
    return %arg0, %c0_i32, %arg1 : i32, i32, i32
  }
  func.func @transform_1(%arg0: i32, %arg1: i32) -> (i32, i32, i32) {
    %c0_i32 = arith.constant 0 : i32
    %c0_i32_0 = arith.constant 0 : i32
    return %arg0, %c0_i32, %arg1 : i32, i32, i32
  }
  func.func @transform_2(%arg0: i32, %arg1: i32) -> (i32, i32, i32) {
    %c0_i32 = arith.constant 0 : i32
    %c0_i32_0 = arith.constant 0 : i32
    %c0_i32_1 = arith.constant 0 : i32
    return %arg0, %c0_i32, %c0_i32_0 : i32, i32, i32
  }
  func.func @transform_3(%arg0: i32, %arg1: i32) -> (i32, i32, i32) {
    %c0_i32 = arith.constant 0 : i32
    %c0_i32_0 = arith.constant 0 : i32
    %c0_i32_1 = arith.constant 0 : i32
    return %arg0, %c0_i32, %c0_i32_0 : i32, i32, i32
  }
}

</mosaic_0001>

<bundles_post_ra>
// kernel: tpu_custom_call.1
= control target key start
LH: loop header
LB: loop body
LE: loop exit
PB: predicated region body
PF: predicated region fallthrough
CT: control target
= control target key end

     0   :  { %9 = vsyncpa [#allocation5], 0  ;;  %s1197_s0 = inlined_call_operand.hbm [shape: f32[2,4,256], index: 0, kind: input, shape index: {}]   ;;  %s1198_s1 = inlined_call_operand.hbm [shape: s32[2,1,256], index: 1, kind: input, shape index: {}]   ;;  %s1199_s2 = inlined_call_operand.hbm [shape: f32[2,1,128], index: 2, kind: output, shape index: {0}]   ;;  %s1200_s3 = inlined_call_operand.hbm [shape: f32[2,1,128], index: 3, kind: output, shape index: {1}]  }
   0x1   :  { %11 = vsyncpa [#allocation5 + $0x1], 0 }
   0x2   :  { %12 = vsyncpa [#allocation8], 0 }
   0x3   :  { %14 = vsyncpa [#allocation8 + $0x1], 0 }
   0x4   :  { %15 = vsyncpa [#allocation6], 0 }
   0x5   :  { %17 = vsyncpa [#allocation6 + $0x1], 0 }
   0x6   :  { %18 = vsyncpa [#allocation11], 0 }
   0x7   :  { %20 = vsyncpa [#allocation11 + $0x1], 0  ;;  %s906_s12 = smov 0   ;;  %s908_s13 = smov 0  }
   0x8   :  { %s910_s14 = smov 0   ;;  %s912_s15 = smov 0  }
   0x9   :  { %s914_s16 = smov 0   ;;  %s916_s17 = smov 0  }
   0xa LB: > { %s595_s18 = sadd.s32 4294967295, %s878_s17   ;;  %s596_s19 = sadd.s32 4294967294, %s878_s17   ;;  %s878_s17 = sphi %s916_s17, %s26_s17   ;;  %s874_s16 = sphi %s914_s16, %s1222_s16   ;;  %s870_s15 = sphi %s912_s15, %s1221_s15   ;;  %s866_s14 = sphi %s910_s14, %s1220_s14   ;;  %s862_s13 = sphi %s908_s13, %s1219_s13   ;;  %s858_s12 = sphi %s906_s12, %s1218_s12  }
   0xb   : > { %s38_s20 = sadd.s32 1, %s874_s16  ;;  %s47_s21 = sadd.s32 1, %s866_s14 }
   0xc   : > { %p40_p0 = scmp.ge.s32.totalorder %s38_s20, 2  ;;  %p54_p1 = scmp.ne.s32.totalorder %s866_s14, %s862_s13 }
   0xd   : > { %p55_p2 = scmp.eq.s32.totalorder %s878_s17, 0  ;;  %p60_p3 = scmp.ne.s32.totalorder %s862_s13, %s858_s12 }
   0xe   : > { %s1224_s20 = smov (%p40_p0, %s38_s20), 0  ;;  %p61_p5 = scmp.eq.s32.totalorder %s595_s18, 0 }
   0xf   : > { %p947_p4 = por %p55_p2, %p54_p1  ;;  %s42_s23 = ssub.s32 %s874_s16, %s1224_s20 }
  0x10   : > { %p112_p6 = scmp.eq.s32.totalorder %s595_s18, 1  ;;  %p45_p7 = scmp.eq.s32.totalorder %s42_s23, 0 }
  0x11   : > { %p953_p8 = por %p61_p5, %p60_p3  ;;  %p118_p10 = scmp.eq.s32.totalorder %s596_s19, 1 }
  0x12   : > { %p957_p9 = por %p112_p6, %p54_p1  ;;  %p641_p13 = scmp.lt.s32.totalorder %s878_s17, 2 }
  0x13   : > { %s1204_s24 = scalar_select %p953_p8, 1, 0 }
  0x14   : > { %s1205_s25 = scalar_select %p957_p9, 1, 0 }
  0x15   : > { %s962_s26 = scalar_select %p45_p7, %s866_s14, %s47_s21  }
  0x16   : > { %p964_p11 = por %p118_p10, %p60_p3  ;;  %s971_s28 = sand.u32 1, %s866_s14  }
  0x17   : > { %s599_s29 = sshll.u32 %s971_s28, 3  ;;  %s613_s30 = sshll.u32 %s874_s16, 7 }
  0x18   : > { %s1206_s27 = scalar_select %p964_p11, 1, 0 }
  0x19   : > { %s978_s6 = scalar_lea.hbm %s1197_s0, %s613_s30  ;;  %s168_s7 = scalar_lea.vmem [#allocation4], %s599_s29 }
  0x1a   : > { %s178_s8 = sshll.u32 %s168_s7, 4  ;;  %p984_p0 = pnand %p641_p13, %p947_p4  ;;  %s980_s8 = int_to_ptr.vmem [resolvable:$true] %s178_s8 }
  0x1b   : > { %s165_s10 = scalar_lea.sflag [#allocation5], %s971_s28  ;;  %s700_s11 = scalar_lea.hbm %s978_s6, 128 }
  0x1c   : > { %p701_p3 = scmp.ne.s32.totalorder %s978_s6, %s700_s11  ;;  %p702_p5 = pneg %p984_p0 }
  0x1d   : > { %s705_s21 = scalar_lea.hbm %s1197_s0, 256  ;;  %p706_p4 = scmp.lt.u32.totalorder %s978_s6, %s1197_s0 }
  0x1e   : > { %p703_p6 = pnand %p702_p5, %p701_p3  ;;  %p707_p10 = scmp.lt.u32.totalorder %s705_s21, %s700_s11 }
  0x1f   : > { %p709_p12 = scmp.lt.u32.totalorder %s700_s11, %s978_s6 }
  0x20   : > { %p704_p7 = pneg %p703_p6  ;;  %p708_p13 = por %p707_p10, %p706_p4 }
  0x22   : > { %p710_p1 = por %p709_p12, %p708_p13 }
  0x24   : > { %p711_p2 = pnand %p710_p1, %p704_p7 }
  0x26   : > { %714 = shalt.err (!%p711_p2)
}
  0x27   : > { %s715_s29 = scalar_lea.vmem %s980_s8, 128  ;;  %s880_s30 = smov [#allocation4]  }
  0x28   : > { %p716_p3 = scmp.ne.s32.totalorder %s980_s8, %s715_s29  ;;  %s720_s4 = sshll.u32 %s880_s30, 4  ;;  %s721_s4 = int_to_ptr.vmem [resolvable:$false] %s720_s4 }
  0x29   : > { %s722_s5 = scalar_lea.vmem %s721_s4, 256  ;;  %p723_p9 = scmp.lt.s32.totalorder %s980_s8, %s721_s4 }
  0x2a   : > { %p718_p6 = pnand %p716_p3, %p702_p5  ;;  %p724_p4 = scmp.lt.s32.totalorder %s722_s5, %s715_s29 }
  0x2c   : > { %p719_p11 = pneg %p718_p6  ;;  %p725_p10 = por %p724_p4, %p723_p9 }
  0x2e   : > { %p726_p12 = pnand %p725_p10, %p719_p11 }
  0x30   : > { %729 = shalt.err (!%p726_p12)
}
  0x31   : > { %630 = dma.hbm_to_vmem [thread:$0]  (!%p984_p0), %s978_s6, 128, %s980_s8, %s165_s10  }
  0x32   : > { %p1208_p1 = scmp.lt.s32.totalorder %s878_s17, 3  ;;  %p1209_p2 = scmp.ge.s32.totalorder %s878_s17, 1 }
  0x33   : > { %s602_s11 = sshll.u32 %s971_s28, 1  ;;  %s614_s18 = sshll.u32 %s874_s16, 5 }
  0x34   : > { %p1020_p7 = pnand %p1209_p2, %p1208_p1  ;;  %s1029_s22 = scalar_lea.hbm %s1198_s1, %s614_s18 }
  0x35   : > { %s189_s23 = scalar_lea.vmem [#allocation7], %s602_s11  ;;  %s186_s6 = scalar_lea.sflag [#allocation8], %s971_s28 }
  0x36   : > { %s1210_s7 = scalar_select %p1020_p7, 1, 0 }
  0x37   : > { %s199_s29 = sshll.u32 %s189_s23, 4  ;;  %s730_s8 = scalar_lea.hbm %s1029_s22, 32  ;;  %s200_s29 = int_to_ptr.vmem [resolvable:$true] %s199_s29 }
  0x38   : > { %p731_p9 = scmp.ne.s32.totalorder %s1029_s22, %s730_s8  ;;  %s735_s4 = scalar_lea.hbm %s1198_s1, 64 }
  0x39   : > { %p736_p3 = scmp.lt.u32.totalorder %s1029_s22, %s1198_s1  ;;  %p737_p6 = scmp.lt.u32.totalorder %s735_s4, %s730_s8 }
  0x3a   : > { %p733_p11 = pnand %p731_p9, %p702_p5  ;;  %p739_p10 = scmp.lt.u32.totalorder %s730_s8, %s1029_s22 }
  0x3b   : > { %p738_p4 = por %p737_p6, %p736_p3 }
  0x3c   : > { %p734_p13 = pneg %p733_p11 }
  0x3d   : > { %p740_p12 = por %p739_p10, %p738_p4 }
  0x3f   : > { %p741_p1 = pnand %p740_p12, %p734_p13 }
  0x41   : > { %744 = shalt.err (!%p741_p1)
}
  0x42   : > { %s745_s28 = scalar_lea.vmem %s200_s29, 32  ;;  %s881_s11 = smov [#allocation7]  }
  0x43   : > { %p746_p2 = scmp.ne.s32.totalorder %s200_s29, %s745_s28  ;;  %s750_s19 = sshll.u32 %s881_s11, 4  ;;  %s751_s19 = int_to_ptr.vmem [resolvable:$false] %s750_s19 }
  0x44   : > { %s752_s21 = scalar_lea.vmem %s751_s19, 64  ;;  %p753_p8 = scmp.lt.s32.totalorder %s200_s29, %s751_s19 }
  0x45   : > { %p748_p9 = pnand %p746_p2, %p702_p5  ;;  %p754_p7 = scmp.lt.s32.totalorder %s752_s21, %s745_s28 }
  0x47   : > { %p749_p11 = pneg %p748_p9  ;;  %p755_p3 = por %p754_p7, %p753_p8 }
  0x49   : > { %p756_p6 = pnand %p755_p3, %p749_p11 }
  0x4b   : > { %759 = shalt.err (!%p756_p6)
}
  0x4c   : > { %633 = dma.hbm_to_vmem [thread:$0]  (!%p984_p0), %s1029_s22, 32, %s200_s29, %s186_s6  }
  0x4d   : > { %p1211_p13 = scmp.ne.s32.totalorder %s1210_s7, 0 }
  0x4e   : > { %s1054_s23 = sand.u32 (!%p1211_p13), 1, %s862_s13   ;;  %p1212_p5 = scmp.ne.s32.totalorder (!%p1211_p13), %s1204_s24, 0 }
  0x4f   : > { %208 = sbr.rel (%p1211_p13) target bundleno = 420 (0x1a4), region = 28  ;;  %s606_s8 = sshll.u32 (!%p1211_p13), %s1054_s23, 3 }
  0x50   : > { %s211_s10 = scalar_lea.sflag (!%p1211_p13), [#allocation5], %s1054_s23  ;;  %s214_s30 = scalar_lea.vmem (!%p1211_p13), [#allocation4], %s606_s8 }
  0x56   : > { %841 = dma.done.wait (%p1212_p5), %s211_s10, 128  }
  0x57   : > { %843 = vsyncadd (%p1212_p5), %s211_s10, 4294967168  ;;  %s607_s9 = sshll.u32 %s1054_s23, 1  ;;  %s220_s7 = scalar_lea.sflag [#allocation8], %s1054_s23 }
  0x58   : > { %s223_s22 = scalar_lea.vmem [#allocation7], %s607_s9 }
  0x59   : > { %845 = dma.done.wait (%p1212_p5), %s220_s7, 32  }
  0x5a   : > { %847 = vsyncadd (%p1212_p5), %s220_s7, 4294967264  ;;  %v260_v0 = vlaneseq  ;;  %v882_v2 = vmov 0.0   ;;  %vm271_vm1 = vcmask 1043456   ;;  %v266_v3 = vld [vmem:[%s214_s30] sm:$0xff]  ;;  %v1076_v4 = vld [vmem:[%s223_s22] sm:$0x3] }
  0x5b   : > { %v269_v5 = vcombine.high %v266_v3, %v266_v3  ;;  %v272_v6 = vsel %vm271_vm1, %v266_v3, -inf  ;;  %vm346_vm2 = vcmp.ne.s32.totalorder %v1076_v4, 255  ;;  %v883_v61 = vmov 1966171168   ;;  %s609_s24 = sshll.u32 %s870_s15, 4  ;;  %s247_s29 = scalar_lea.vmem [#allocation9], %s1054_s23 }
  0x5c   : > { %vm1068_vm0 = vcmp.lt.s32.totalorder %v260_v0, 256  ;;  %v273_v7 = vrot.slane %v272_v6, 4  ;;  %v608_v10 = vsel %vm346_vm2, 1.0, %v882_v2  ;;  %v317_v24 = vshrl.u32 %v260_v0, 7  ;;  %s451_s6 = sshll.u32 %s247_s29, 4  ;;  %s253_s4 = scalar_lea.vmem [#allocation10], %s1054_s23  ;;  %s1117_s6 = int_to_ptr.vmem [resolvable:$true] %s451_s6 }
  0x5d   : > { %264 = vst.msk [vmem:[#allocation2] sm:$0x3] %vm1068_vm0, %v882_v2  ;;  %265 = vst.msk [vmem:[#allocation3] sm:$0x3] %vm1068_vm0, %v882_v2  ;;  %v279_v8 = vsel %vm271_vm1, %v269_v5, -inf  ;;  %v352_v62 = vunpack.c.l.s4 %v883_v61  ;;  %vm393_vm5 = vcmask 1040384   ;;  %s1115_s11 = scalar_lea.hbm %s1199_s2, %s609_s24 }
  0x5e   : > { %v274_v11 = vmax.f32 %v272_v6, %v273_v7  ;;  %v280_v12 = vrot.slane %v279_v8, 4  ;;  %v1085_v27 = vsub.s32 0, %v317_v24  ;;  %v1087_v28 = vsub.s32 1, %v317_v24  ;;  %s464_s5 = sshll.u32 %s253_s4, 4  ;;  %s435_s21 = scalar_lea.sflag [#allocation6], %s1054_s23  ;;  %s1119_s5 = int_to_ptr.vmem [resolvable:$true] %s464_s5 }
  0x5f   : > { %s760_s8 = scalar_lea.vmem %s1117_s6, 16  ;;  %p1215_p0 = scmp.ne.s32.totalorder %s1205_s25, 0 }
  0x60   : > { %v275_v14 = vrot.slane %v274_v11, 2  ;;  %v281_v15 = vmax.f32 %v279_v8, %v280_v12  ;;  %v321_v29 = vrot.slane %v1076_v4, %v1085_v27  ;;  %v325_v30 = vrot.slane %v1076_v4, %v1087_v28  ;;  %p761_p8 = scmp.ne.s32.totalorder %s1117_s6, %s760_s8  ;;  %s884_s10 = smov [#allocation9]  }
  0x61   : > { %v353_v8 = vunpack.c.0.s8 %v352_v62  ;;  %s764_s30 = sshll.u32 %s884_s10, 4  ;;  %s765_s30 = int_to_ptr.vmem [resolvable:$false] %s764_s30 }
  0x62   : > { %v276_v16 = vmax.f32 %v274_v11, %v275_v14  ;;  %v282_v17 = vrot.slane %v281_v15, 2  ;;  %vm326_vm3 = vcmp.eq.s32.totalorder %v317_v24, %v321_v29  ;;  %vm327_vm4 = vcmp.eq.s32.totalorder %v317_v24, %v325_v30  ;;  %p762_p7 = pnand %p761_p8, %p1215_p0  ;;  %s766_s9 = scalar_lea.vmem %s765_s30, 32 }
  0x63   : > { %v328_v31 = vsel %vm326_vm3, %v266_v3, 0.0  ;;  %v329_v35 = vsel %vm327_vm4, %v269_v5, 0.0  ;;  %v356_v12 = vsub.s32 %v353_v8, %v317_v24  ;;  %p767_p10 = scmp.lt.s32.totalorder %s1117_s6, %s765_s30  ;;  %p768_p12 = scmp.lt.s32.totalorder %s766_s9, %s760_s8 }
  0x64   : > { %v373_v9 = vld [vmem:[#allocation3] sm:$0x3]  ;;  %v277_v18 = vrot.slane %v276_v16, 1  ;;  %v283_v19 = vmax.f32 %v281_v15, %v282_v17  ;;  %v330_v37 = vsel %vm271_vm1, %v328_v31, 0.0  ;;  %v337_v41 = vsel %vm271_vm1, %v329_v35, 0.0  ;;  %p763_p4 = pneg %p762_p7 }
  0x65   : > { %v376_v13 = vadd.f32 %v608_v10, %v373_v9  ;;  %v331_v42 = vrot.slane %v330_v37, 4  ;;  %v338_v45 = vrot.slane %v337_v41, 4  ;;  %v347_v15 = vld [vmem:[#allocation2] sm:$0x3]  ;;  %p769_p1 = por %p768_p12, %p767_p10 }
  0x66   : > { %v278_v20 = vmax.f32 %v276_v16, %v277_v18  ;;  %v284_v21 = vrot.slane %v283_v19, 1 }
  0x67   : > { %377 = vst.msk [vmem:[#allocation3] sm:$0x3] %vm1068_vm0, %v376_v13  ;;  %v332_v48 = vadd.f32 %v331_v42, %v330_v37  ;;  %v339_v51 = vadd.f32 %v338_v45, %v337_v41  ;;  %p770_p2 = pnand %p769_p1, %p763_p4 }
  0x68   : > { %v285_v22 = vmax.f32 %v283_v19, %v284_v21 }
  0x69   : > { %v333_v54 = vrot.slane %v332_v48, 2  ;;  %v340_v56 = vrot.slane %v339_v51, 2 }
  0x6a   : > { %v288_v23 = vcombine.low %v278_v20, %v285_v22 }
  0x6b   : > { %v334_v57 = vadd.f32 %v333_v54, %v332_v48  ;;  %v341_v58 = vadd.f32 %v340_v56, %v339_v51 }
  0x6c   : > { %v290_v25 = vsub.f32 %v266_v3, %v288_v23 }
  0x6d   : > { %v335_v59 = vrot.slane %v334_v57, 1  ;;  %v342_v60 = vrot.slane %v341_v58, 1 }
  0x6e   : > { %v291_v26 = vmul.f32 1.442695, %v290_v25  ;;  %v408_v19 = vld [vmem:[#allocation3] sm:$0x3] }
  0x6f   : > { %v336_v2 = vadd.f32 %v335_v59, %v334_v57  ;;  %v343_v7 = vadd.f32 %v342_v60, %v341_v58  ;;  %v417_v21 = vrot.slane %v408_v19, %v1087_v28 }
  0x70   : > { %694 = vpow2.f32 %v291_v26 }
  0x71   : > { %v421_v4 = vsel %vm393_vm5, %v417_v21, 0.0 }
  0x7a   : > { %v695_v32 = vpop.eup %694 }
  0x7b   : > { %v294_v33 = vcombine.high %v695_v32, %v695_v32  ;;  %v296_v34 = vsel %vm271_vm1, %v695_v32, 0.0 }
  0x7c   : > { %v297_v36 = vrot.slane %v296_v34, 4 }
  0x7d   : > { %v303_v38 = vsel %vm271_vm1, %v294_v33, 0.0 }
  0x7e   : > { %v298_v39 = vadd.f32 %v297_v36, %v296_v34  ;;  %v304_v40 = vrot.slane %v303_v38, 4 }
  0x80   : > { %v299_v43 = vrot.slane %v298_v39, 2  ;;  %v305_v44 = vadd.f32 %v304_v40, %v303_v38 }
  0x82   : > { %v300_v46 = vadd.f32 %v299_v43, %v298_v39  ;;  %v306_v47 = vrot.slane %v305_v44, 2 }
  0x84   : > { %v301_v49 = vrot.slane %v300_v46, 1  ;;  %v307_v50 = vadd.f32 %v306_v47, %v305_v44 }
  0x86   : > { %v302_v52 = vadd.f32 %v301_v49, %v300_v46  ;;  %v308_v53 = vrot.slane %v307_v50, 1 }
  0x88   : > { %v309_v55 = vadd.f32 %v308_v53, %v307_v50  ;;  %696 = vlog2.f32 %v302_v52 }
  0x8a   : > { %698 = vlog2.f32 %v309_v55 }
  0x92   : > { %v697_v63 = vpop.eup %696 }
  0x93   : > { %v311_v0 = vmul.f32 0.6931472, %v697_v63 }
  0x94   : > { %v699_v3 = vpop.eup %698 }
  0x95   : > { %v313_v5 = vmul.f32 0.6931472, %v699_v3  ;;  %v314_v6 = vadd.f32 %v311_v0, %v278_v20  ;;  %v413_v20 = vrot.slane %v408_v19, %v1085_v27 }
  0x97   : > { %v315_v9 = vadd.f32 %v313_v5, %v285_v22  ;;  %v344_v10 = vsub.f32 %v314_v6, %v336_v2  ;;  %v420_v29 = vsel %vm393_vm5, %v413_v20, 0.0 }
  0x98   : > { %v422_v31 = vadd.f32 %v421_v4, %v420_v29 }
  0x99   : > { %v345_v11 = vsub.f32 %v315_v9, %v343_v7 }
  0x9b   : > { %v350_v13 = vcombine.low %v344_v10, %v345_v11 }
  0x9d   : > { %v357_v14 = vrot.slane %v350_v13, %v356_v12 }
  0x9f   : > { %v364_v16 = vrot.slane %v357_v14, %v356_v12 }
  0xa1   : > { %v366_v17 = vsel %vm346_vm2, %v364_v16, 0.0 }
  0xa2   : > { %v367_v18 = vadd.f32 %v366_v17, %v347_v15 }
  0xa4   : > { %372 = vst.msk [vmem:[#allocation2] sm:$0x3] %vm1068_vm0, %v367_v18 }
  0xab   : > { %v381_v22 = vld [vmem:[#allocation2] sm:$0x3] }
  0xac   : > { %v386_v23 = vrot.slane %v381_v22, %v1085_v27  ;;  %v390_v24 = vrot.slane %v381_v22, %v1087_v28 }
  0xae   : > { %v394_v25 = vsel %vm393_vm5, %v386_v23, 0.0  ;;  %v395_v26 = vsel %vm393_vm5, %v390_v24, 0.0 }
  0xaf   : > { %v396_v30 = vadd.f32 %v395_v26, %v394_v25 }
  0xb1   : > { %397 = vadd.xlane.f32.xlu0 %v396_v30 }
  0xb5   : > { %423 = vadd.xlane.f32.xlu0 %v422_v31 }
 0x13e   : > { %v398_v1 = vpop.xlane.xlu0 %397 }
 0x13f   : > { %v399_v32 = vrot.slane %v398_v1, 4 }
 0x141   : > { %v400_v33 = vadd.f32 %v399_v32, %v398_v1 }
 0x142   : > { %v424_v34 = vpop.xlane.xlu0 %423 }
 0x143   : > { %v401_v35 = vrot.slane %v400_v33, 2  ;;  %v425_v27 = vrot.slane %v424_v34, 4 }
 0x145   : > { %v426_v28 = vadd.f32 %v425_v27, %v424_v34  ;;  %v402_v36 = vadd.f32 %v401_v35, %v400_v33 }
 0x147   : > { %v427_v37 = vrot.slane %v426_v28, 2  ;;  %v403_v38 = vrot.slane %v402_v36, 1 }
 0x149   : > { %v428_v39 = vadd.f32 %v427_v37, %v426_v28  ;;  %v404_v40 = vadd.f32 %v403_v38, %v402_v36 }
 0x14b   : > { %615 = vpush %v404_v40  ;;  %v429_v41 = vrot.slane %v428_v39, 1 }
 0x14d   : > { %v430_v42 = vadd.f32 %v429_v41, %v428_v39 }
 0x14f   : > { %617 = vpush %v430_v42 }
 0x17c   : > { %s616_s19 = spop %615 }
 0x17d   : > { %v406_v43 = vstv %s616_s19 }
 0x17e   : > { %407 = vst [vmem:[%s247_s29] sm:$0x1] %v406_v43 }
 0x17f   : > { %773 = shalt.err (!%p770_p2)
}
 0x180   : > { %s774_s7 = scalar_lea.hbm %s1115_s11, 16  ;;  %s778_s18 = scalar_lea.hbm %s1199_s2, 32 }
 0x181   : > { %p775_p9 = scmp.ne.s32.totalorder %s1115_s11, %s774_s7  ;;  %p779_p6 = scmp.lt.u32.totalorder %s1115_s11, %s1199_s2 }
 0x182   : > { %p780_p13 = scmp.lt.u32.totalorder %s778_s18, %s774_s7  ;;  %p782_p8 = scmp.lt.u32.totalorder %s774_s7, %s1115_s11 }
 0x183   : > { %p776_p11 = pnand %p775_p9, %p1215_p0 }
 0x184   : > { %p781_p5 = por %p780_p13, %p779_p6 }
 0x185   : > { %p777_p3 = pneg %p776_p11 }
 0x186   : > { %p783_p7 = por %p782_p8, %p781_p5 }
 0x188   : > { %p784_p4 = pnand %p783_p7, %p777_p3 }
 0x18a   : > { %787 = shalt.err (!%p784_p4)
}
 0x18b   : > { %623 = dma.vmem_to_hbm [thread:$0]  (%p1215_p0), %s1117_s6, 16, %s1115_s11, %s435_s21  }
 0x18c   : > { %s618_s8 = spop %617  ;;  %s1148_s9 = scalar_lea.hbm %s1200_s3, %s609_s24 }
 0x18d   : > { %v432_v44 = vstv %s618_s8  ;;  %s439_s7 = scalar_lea.sflag [#allocation11], %s1054_s23  ;;  %s788_s22 = scalar_lea.vmem %s1119_s5, 16 }
 0x18e   : > { %433 = vst [vmem:[%s253_s4] sm:$0x1] %v432_v44  ;;  %p789_p10 = scmp.ne.s32.totalorder %s1119_s5, %s788_s22  ;;  %s885_s29 = smov [#allocation10]  }
 0x18f   : > { %s792_s18 = sshll.u32 %s885_s29, 4  ;;  %s793_s18 = int_to_ptr.vmem [resolvable:$false] %s792_s18 }
 0x190   : > { %p790_p12 = pnand %p789_p10, %p1215_p0  ;;  %s794_s6 = scalar_lea.vmem %s793_s18, 32 }
 0x191   : > { %p795_p2 = scmp.lt.s32.totalorder %s1119_s5, %s793_s18  ;;  %p796_p9 = scmp.lt.s32.totalorder %s794_s6, %s788_s22 }
 0x192   : > { %p791_p1 = pneg %p790_p12 }
 0x193   : > { %p797_p11 = por %p796_p9, %p795_p2 }
 0x195   : > { %p798_p3 = pnand %p797_p11, %p791_p1 }
 0x197   : > { %801 = shalt.err (!%p798_p3)
}
 0x198   : > { %s802_s15 = scalar_lea.hbm %s1148_s9, 16  ;;  %s806_s4 = scalar_lea.hbm %s1200_s3, 32 }
 0x199   : > { %p803_p6 = scmp.ne.s32.totalorder %s1148_s9, %s802_s15  ;;  %p807_p8 = scmp.lt.u32.totalorder %s1148_s9, %s1200_s3 }
 0x19a   : > { %p808_p7 = scmp.lt.u32.totalorder %s806_s4, %s802_s15  ;;  %p810_p10 = scmp.lt.u32.totalorder %s802_s15, %s1148_s9 }
 0x19b   : > { %p804_p13 = pnand %p803_p6, %p1215_p0 }
 0x19c   : > { %p809_p4 = por %p808_p7, %p807_p8 }
 0x19d   : > { %p805_p5 = pneg %p804_p13 }
 0x19e   : > { %p811_p12 = por %p810_p10, %p809_p4 }
 0x1a0   : > { %p812_p1 = pnand %p811_p12, %p805_p5 }
 0x1a2   : > { %815 = shalt.err (!%p812_p1)
}
 0x1a3   : > { %624 = dma.vmem_to_hbm [thread:$0]  (%p1215_p0), %s1119_s5, 16, %s1148_s9, %s439_s7  }
 0x1a4 PF: > { %s476_s28 = sand.u32 1, %s858_s12   ;;  %p1216_p2 = scmp.ne.s32.totalorder %s1206_s27, 0 }
 0x1a5   : > { %p1217_p9 = scmp.ge.s32.totalorder %s878_s17, 2  ;;  %s477_s19 = scalar_lea.sflag [#allocation6], %s476_s28 }
 0x1a7   : > { %p635_p11 = pnand %p1217_p9, %p1216_p2 }
 0x1a9   : > { %849 = dma.done.wait (!%p635_p11), %s477_s19, 16  }
 0x1aa   : > { %851 = vsyncadd (!%p635_p11), %s477_s19, 4294967280  ;;  %s485_s8 = scalar_lea.sflag [#allocation11], %s476_s28 }
 0x1ab   : > { %853 = dma.done.wait (!%p635_p11), %s485_s8, 16  }
 0x1ac   : > { %855 = vsyncadd (!%p635_p11), %s485_s8, 4294967280  ;;  %s26_s17 = sadd.s32 1, %s878_s17   ;;  %s1218_s12 = smov %s862_s13 }
 0x1ad   : > { %p23_p3 = scmp.ge.s32.totalorder %s26_s17, 4   ;;  %s1219_s13 = smov %s866_s14 }
 0x1ae   : > { %s1220_s14 = smov %s962_s26  ;;  %s1221_s15 = smov %s874_s16 }
 0x1af   : > { %s1222_s16 = smov %s1224_s20  ;;  %25 = sbr.rel (!%p23_p3) target bundleno = 10 (0xa), region = 111 }
 0x1b6   :  { %489 = vsyncpa [#allocation5], 1 }
 0x1b7   :  { %491 = vsyncpa [#allocation5 + $0x1], 1 }
 0x1b8   :  { %492 = vsyncpa [#allocation8], 1 }
 0x1b9   :  { %494 = vsyncpa [#allocation8 + $0x1], 1 }
 0x1ba   :  { %495 = vsyncpa [#allocation6], 1 }
 0x1bb   :  { %497 = vsyncpa [#allocation6 + $0x1], 1 }
 0x1bc   :  { %498 = vsyncpa [#allocation11], 1 }
 0x1bd   :  { %500 = vsyncpa [#allocation11 + $0x1], 1 }

</bundles_post_ra>
